<compile_context>
chip_gen: v7x
topology: tpu7x:2x2x1
jax: 0.10.0
libtpu: 0.0.40
codegen_flags: <defaults>
</compile_context>

<pallas_src>
from typing import List

import jax
import jax.numpy as jnp
from jax.experimental import pallas as pl
from jax.experimental.pallas import tpu as pltpu

_LANE = 128      # last-dim (lane) alignment
_SUBLANE = 8     # second-to-last-dim (sublane) alignment


def _round_up(x: int, m: int) -> int:
    return (x + m - 1) // m * m


def _apply_activation(y, activation: str):
    if activation == "relu":
        return jnp.maximum(y, 0.0)
    if activation == "tanh":
        return jnp.tanh(y)
    if activation == "sigmoid":
        return jax.nn.sigmoid(y)
    if activation == "none":
        return y
    raise ValueError(f"bad activation {activation}")


def _make_fused_mlp_kernel(num_layers: int, activation: str, compute_dtype):
    """Kernel: h = x; for each layer h = act(h @ W_i + b_i); no act on last layer."""

    def kernel(*refs):
        x_ref = refs[0]
        o_ref = refs[-1]
        h = x_ref[...]                                   # [B_pad, in_pad] f32
        for i in range(num_layers):
            w_ref = refs[1 + 2 * i]                      # [in_pad_i, out_pad_i]
            b_ref = refs[2 + 2 * i]                      # [1, out_pad_i] f32
            y = jnp.dot(h.astype(compute_dtype), w_ref[...],
                        preferred_element_type=jnp.float32)   # MXU, f32 accum
            y = y + b_ref[...]                           # broadcast over sublanes
            act = activation if i < num_layers - 1 else "none"
            h = _apply_activation(y, act)                # stays f32
        o_ref[...] = h.astype(o_ref.dtype)

    return kernel


def fused_mlp_forward(x_pad, weights_pad, biases_pad, activation, compute_dtype):
    """x_pad: [B_pad, in_pad]; weights_pad[i]: [in_pad_i, out_pad_i]; biases_pad[i]: [1, out_pad_i]."""
    num_layers = len(weights_pad)
    batch_pad = x_pad.shape[0]
    out_pad = weights_pad[-1].shape[1]

    kernel = _make_fused_mlp_kernel(num_layers, activation, compute_dtype)

    # Whole model (~<1 MB padded) is VMEM-resident: empty grid, every block is
    # the full (lane/sublane-dense) array.
    # TODO(synk): for large batch / wide hidden layers this full-resident design
    # would need a (batch_tiles, out_tiles, k_tiles) grid with an f32 VMEM
    # accumulator and dimension_semantics=("parallel","parallel","arbitrary").
    in_specs = [pl.BlockSpec(x_pad.shape, lambda: (0, 0))]
    operands = [x_pad]
    for w, b in zip(weights_pad, biases_pad):
        in_specs.append(pl.BlockSpec(w.shape, lambda: (0, 0)))
        in_specs.append(pl.BlockSpec(b.shape, lambda: (0, 0)))
        operands.append(w)
        operands.append(b)

    return pl.pallas_call(
        kernel,
        out_shape=jax.ShapeDtypeStruct((batch_pad, out_pad), jnp.float32),
        in_specs=in_specs,
        out_specs=pl.BlockSpec((batch_pad, out_pad), lambda: (0, 0)),
        compiler_params=pltpu.CompilerParams(vmem_limit_bytes=32 * 1024 * 1024),
    )(*operands)


class MLPPallas:
    """JAX/Pallas re-implementation of the PyTorch MLP module (forward only)."""

    def __init__(self, input_size: int, hidden_sizes: List[int], num_classes: int,
                 activation: str = "relu", seed: int = 0,
                 compute_dtype=jnp.bfloat16):
        # Kept identical to the PyTorch spec's checks.
        assert len(hidden_sizes) > 1, "You should at least have one hidden layer"
        assert activation in ["tanh", "relu", "sigmoid"], "Invalid choice of activation"
        self.input_size = input_size
        self.hidden_sizes = list(hidden_sizes)
        self.num_classes = num_classes
        self.activation = activation
        self.compute_dtype = compute_dtype

        dims = [input_size] + list(hidden_sizes) + [num_classes]
        dims_pad = [_round_up(d, _LANE) for d in dims]
        self.dims = dims
        self.dims_pad = dims_pad

        key = jax.random.PRNGKey(seed)
        self.weights = []      # PyTorch layout [out, in], f32 (for the reference)
        self.biases = []       # [out], f32
        self.weights_pad = []  # kernel layout [in_pad, out_pad], compute_dtype
        self.biases_pad = []   # [1, out_pad], f32
        for i in range(len(dims) - 1):
            fan_in, fan_out = dims[i], dims[i + 1]
            key, sub = jax.random.split(key)
            # xavier_normal_: std = sqrt(2 / (fan_in + fan_out)); bias zeros_.
            std = (2.0 / (fan_in + fan_out)) ** 0.5
            w = std * jax.random.normal(sub, (fan_out, fan_in), dtype=jnp.float32)
            b = jnp.zeros((fan_out,), dtype=jnp.float32)
            self.weights.append(w)
            self.biases.append(b)

            # Hoisted out of the forward path: transpose + zero-pad + cast, once.
            w_t = jnp.zeros((dims_pad[i], dims_pad[i + 1]), jnp.float32)
            w_t = w_t.at[:fan_in, :fan_out].set(w.T)
            b_p = jnp.zeros((1, dims_pad[i + 1]), jnp.float32)
            b_p = b_p.at[0, :fan_out].set(b)
            self.weights_pad.append(w_t.astype(compute_dtype))
            self.biases_pad.append(b_p)

    def __call__(self, images):
        """images: [batch, channels, height, width] -> logits [batch, num_classes]."""
        batch = images.shape[0]
        x = images.reshape(batch, -1).astype(jnp.float32)  # same order as torch .view
        assert x.shape[1] == self.input_size, "Wrong Input Features"

        # Pad batch to a sublane multiple and input width to a lane multiple.
        batch_pad = _round_up(max(batch, _SUBLANE), _SUBLANE)
        x_pad = jnp.zeros((batch_pad, self.dims_pad[0]), jnp.float32)
        x_pad = x_pad.at[:batch, : self.dims[0]].set(x)

        logits_pad = fused_mlp_forward(x_pad, self.weights_pad, self.biases_pad,
                                       self.activation, self.compute_dtype)
        return logits_pad[:batch, : self.num_classes]


def _reference_forward(mlp: MLPPallas, images):
    """Pure-jnp reference that mirrors the kernel's dtype handling exactly."""
    x = images.reshape(images.shape[0], -1).astype(jnp.float32)
    act = {"relu": lambda v: jnp.maximum(v, 0.0),
           "tanh": jnp.tanh,
           "sigmoid": jax.nn.sigmoid}[mlp.activation]
    n_hidden = len(mlp.hidden_sizes)
    for i in range(n_hidden + 1):
        w = mlp.weights[i].astype(mlp.compute_dtype).astype(jnp.float32)
        h = x.astype(mlp.compute_dtype).astype(jnp.float32)
        y = h @ w.T + mlp.biases[i]
        x = act(y) if i < n_hidden else y
    return x


if __name__ == "__main__":
    # Small shapes consistent with forward(images: [batch, channels, height, width]).
    batch, channels, height, width = 2, 4, 16, 16
    input_size = channels * height * width          # 1024
    hidden_sizes = [32, 32]
    num_classes = 10

    key = jax.random.PRNGKey(0)
    images = jax.random.normal(key, (batch, channels, height, width), dtype=jnp.float32)

    mlp = MLPPallas(input_size, hidden_sizes, num_classes, activation="relu", seed=0)

    logits = mlp(images)
    logits = jax.block_until_ready(logits)

    ref = _reference_forward(mlp, images)
    assert logits.shape == (batch, num_classes)
    assert jnp.allclose(logits, ref, atol=2e-3, rtol=2e-3), (
        f"max abs err {jnp.max(jnp.abs(logits - ref))}")

    print("KERNEL_OK")
</pallas_src>

<mosaic_0001>
module attributes {stable_mosaic.version = 11 : i64} {
  func.func @kernel(%arg0: memref<8x1024xf32, #tpu.memory_space<vmem>>, %arg1: memref<1024x128xbf16, #tpu.memory_space<vmem>>, %arg2: memref<1x128xf32, #tpu.memory_space<vmem>>, %arg3: memref<128x128xbf16, #tpu.memory_space<vmem>>, %arg4: memref<1x128xf32, #tpu.memory_space<vmem>>, %arg5: memref<128x128xbf16, #tpu.memory_space<vmem>>, %arg6: memref<1x128xf32, #tpu.memory_space<vmem>>, %arg7: memref<8x128xf32, #tpu.memory_space<vmem>>) attributes {dimension_semantics = [], scalar_prefetch = 0 : i64, scratch_operands = 0 : i64, tpu.core_type = #tpu.core_type<tc>} {
    %c0 = arith.constant 0 : index
    %c0_0 = arith.constant 0 : index
    %0 = vector.load %arg0[%c0, %c0_0] : memref<8x1024xf32, #tpu.memory_space<vmem>>, vector<8x1024xf32>
    %1 = arith.truncf %0 : vector<8x1024xf32> to vector<8x1024xbf16>
    %c0_1 = arith.constant 0 : index
    %c0_2 = arith.constant 0 : index
    %2 = vector.load %arg1[%c0_1, %c0_2] : memref<1024x128xbf16, #tpu.memory_space<vmem>>, vector<1024x128xbf16>
    %cst = arith.constant dense<0.000000e+00> : vector<8x128xf32>
    %3 = tpu.matmul %1, %2, %cst {dimension_numbers = #tpu.dot_dimension_numbers<[1], [0], [0], [1], [0, 0, 1, 1], [], []>} : vector<8x1024xbf16>, vector<1024x128xbf16>, vector<8x128xf32> -> vector<8x128xf32>
    %c0_3 = arith.constant 0 : index
    %c0_4 = arith.constant 0 : index
    %4 = vector.load %arg2[%c0_3, %c0_4] : memref<1x128xf32, #tpu.memory_space<vmem>>, vector<1x128xf32>
    %5 = vector.broadcast %4 : vector<1x128xf32> to vector<8x128xf32>
    %6 = arith.addf %3, %5 : vector<8x128xf32>
    %cst_5 = arith.constant 0.000000e+00 : f32
    %7 = vector.broadcast %cst_5 : f32 to vector<8x128xf32>
    %8 = arith.maximumf %6, %7 : vector<8x128xf32>
    %9 = arith.truncf %8 : vector<8x128xf32> to vector<8x128xbf16>
    %c0_6 = arith.constant 0 : index
    %c0_7 = arith.constant 0 : index
    %10 = vector.load %arg3[%c0_6, %c0_7] : memref<128x128xbf16, #tpu.memory_space<vmem>>, vector<128x128xbf16>
    %cst_8 = arith.constant dense<0.000000e+00> : vector<8x128xf32>
    %11 = tpu.matmul %9, %10, %cst_8 {dimension_numbers = #tpu.dot_dimension_numbers<[1], [0], [0], [1], [0, 0, 1, 1], [], []>} : vector<8x128xbf16>, vector<128x128xbf16>, vector<8x128xf32> -> vector<8x128xf32>
    %c0_9 = arith.constant 0 : index
    %c0_10 = arith.constant 0 : index
    %12 = vector.load %arg4[%c0_9, %c0_10] : memref<1x128xf32, #tpu.memory_space<vmem>>, vector<1x128xf32>
    %13 = vector.broadcast %12 : vector<1x128xf32> to vector<8x128xf32>
    %14 = arith.addf %11, %13 : vector<8x128xf32>
    %cst_11 = arith.constant 0.000000e+00 : f32
    %15 = vector.broadcast %cst_11 : f32 to vector<8x128xf32>
    %16 = arith.maximumf %14, %15 : vector<8x128xf32>
    %17 = arith.truncf %16 : vector<8x128xf32> to vector<8x128xbf16>
    %c0_12 = arith.constant 0 : index
    %c0_13 = arith.constant 0 : index
    %18 = vector.load %arg5[%c0_12, %c0_13] : memref<128x128xbf16, #tpu.memory_space<vmem>>, vector<128x128xbf16>
    %cst_14 = arith.constant dense<0.000000e+00> : vector<8x128xf32>
    %19 = tpu.matmul %17, %18, %cst_14 {dimension_numbers = #tpu.dot_dimension_numbers<[1], [0], [0], [1], [0, 0, 1, 1], [], []>} : vector<8x128xbf16>, vector<128x128xbf16>, vector<8x128xf32> -> vector<8x128xf32>
    %c0_15 = arith.constant 0 : index
    %c0_16 = arith.constant 0 : index
    %20 = vector.load %arg6[%c0_15, %c0_16] : memref<1x128xf32, #tpu.memory_space<vmem>>, vector<1x128xf32>
    %21 = vector.broadcast %20 : vector<1x128xf32> to vector<8x128xf32>
    %22 = arith.addf %19, %21 : vector<8x128xf32>
    %c0_17 = arith.constant 0 : index
    %c0_18 = arith.constant 0 : index
    %23 = vector.load %arg7[%c0_17, %c0_18] : memref<8x128xf32, #tpu.memory_space<vmem>>, vector<8x128xf32>
    tpu.vector_store %arg7[%c0_17, %c0_18], %22 {strides = array<i32>} : memref<8x128xf32, #tpu.memory_space<vmem>>, vector<8x128xf32>,
    return
  }
}

</mosaic_0001>

<bundles_post_ra>
// kernel: tpu_custom_call.1
= control target key start
LH: loop header
LB: loop body
LE: loop exit
PB: predicated region body
PF: predicated region fallthrough
CT: control target
= control target key end

     0   :  { %12 = vsyncpa [#allocation3], 0  ;;  %s1601_s0 = inlined_call_operand.hbm [shape: f32[8,1024], index: 0, kind: input, shape index: {}]   ;;  %s1602_s1 = inlined_call_operand.hbm [shape: bf16[1024,128], index: 1, kind: input, shape index: {}]   ;;  %s1603_s2 = inlined_call_operand.vmem [shape: f32[1,128], index: 2, kind: input, shape index: {}]   ;;  %s1604_s3 = inlined_call_operand.hbm [shape: bf16[128,128], index: 3, kind: input, shape index: {}]   ;;  %s1605_s4 = inlined_call_operand.vmem [shape: f32[1,128], index: 4, kind: input, shape index: {}]   ;;  %s1606_s5 = inlined_call_operand.hbm [shape: bf16[128,128], index: 5, kind: input, shape index: {}]   ;;  %s1607_s6 = inlined_call_operand.vmem [shape: f32[1,128], index: 6, kind: input, shape index: {}]   ;;  %s1608_s7 = inlined_call_operand.hbm [shape: f32[8,128], index: 7, kind: output, shape index: {}]  }
   0x1   :  { %13 = vsyncpa [#allocation6], 0 }
   0x2   :  { %14 = vsyncpa [#allocation9], 0 }
   0x3   :  { %15 = vsyncpa [#allocation4], 0  ;;  %s1456_s24 = smov [#allocation5]   ;;  %s1338_s28 = scalar_lea.hbm %s1602_s1, 8192 }
   0x4   :  { %s31_s25 = sshll.u32 %s1456_s24, 4  ;;  %p1339_p0 = scmp.ne.s32.totalorder %s1602_s1, %s1338_s28  ;;  %s32_s25 = int_to_ptr.vmem [resolvable:$true] %s31_s25 }
   0x5   :  { %p1342_p1 = scmp.lt.u32.totalorder %s1338_s28, %s1602_s1 }
   0x7   :  { %p1344_p2 = pnand %p1342_p1, %p1339_p0 }
   0x9   :  { %1347 = shalt.err (!%p1344_p2)
}
   0xa   :  { %s1348_s10 = scalar_lea.vmem %s32_s25, 8192  ;;  %p1353_p4 = scmp.lt.s32.totalorder %s32_s25, %s32_s25 }
   0xb   :  { %p1349_p3 = scmp.ne.s32.totalorder %s32_s25, %s1348_s10  ;;  %p1354_p5 = scmp.lt.s32.totalorder %s1348_s10, %s1348_s10 }
   0xd   :  { %p1355_p6 = por %p1354_p5, %p1353_p4 }
   0xf   :  { %p1356_p7 = pnand %p1355_p6, %p1349_p3 }
  0x11   :  { %1359 = shalt.err (!%p1356_p7)
}
  0x12   :  { %s1457_s11 = smov 64   ;;  %s1458_s12 = smov 4  }
  0x13   :  { %37 = dma.hbm_to_vmem [thread:$0]  %s1602_s1, 8192, %s32_s25, [#allocation6], %s1457_s11, %s1457_s11, %s1458_s12  }
  0x14   :  { %s1459_s15 = smov [#allocation2]   ;;  %s1460_s17 = smov [#allocation7]  }
  0x15   :  { %s22_s16 = sshll.u32 %s1459_s15, 4  ;;  %s45_s18 = sshll.u32 %s1460_s17, 4  ;;  %s23_s16 = int_to_ptr.vmem [resolvable:$true] %s22_s16  ;;  %s46_s18 = int_to_ptr.vmem [resolvable:$true] %s45_s18 }
  0x16   :  { %s1360_s21 = scalar_lea.hbm %s1601_s0, 1024 }
  0x17   :  { %p1361_p8 = scmp.ne.s32.totalorder %s1601_s0, %s1360_s21  ;;  %p1364_p9 = scmp.lt.u32.totalorder %s1360_s21, %s1601_s0 }
  0x19   :  { %p1366_p10 = pnand %p1364_p9, %p1361_p8 }
  0x1b   :  { %1369 = shalt.err (!%p1366_p10)
}
  0x1c   :  { %s1370_s1 = scalar_lea.vmem %s23_s16, 1024  ;;  %p1375_p12 = scmp.lt.s32.totalorder %s23_s16, %s23_s16 }
  0x1d   :  { %p1371_p11 = scmp.ne.s32.totalorder %s23_s16, %s1370_s1  ;;  %p1376_p13 = scmp.lt.s32.totalorder %s1370_s1, %s1370_s1 }
  0x1f   :  { %p1377_p0 = por %p1376_p13, %p1375_p12 }
  0x21   :  { %p1378_p1 = pnand %p1377_p0, %p1371_p11 }
  0x23   :  { %1381 = shalt.err (!%p1378_p1)
}
  0x24   :  { %25 = dma.hbm_to_vmem [thread:$0]  %s1601_s0, 1024, %s23_s16, [#allocation3]  }
  0x25   :  { %s1382_s30 = scalar_lea.hbm %s1604_s3, 1024 }
  0x26   :  { %p1383_p2 = scmp.ne.s32.totalorder %s1604_s3, %s1382_s30  ;;  %p1386_p3 = scmp.lt.u32.totalorder %s1382_s30, %s1604_s3 }
  0x28   :  { %p1388_p4 = pnand %p1386_p3, %p1383_p2 }
  0x2a   :  { %1391 = shalt.err (!%p1388_p4)
}
  0x2b   :  { %s1392_s14 = scalar_lea.vmem %s46_s18, 1024  ;;  %p1397_p6 = scmp.lt.s32.totalorder %s46_s18, %s46_s18 }
  0x2c   :  { %p1393_p5 = scmp.ne.s32.totalorder %s46_s18, %s1392_s14  ;;  %p1398_p7 = scmp.lt.s32.totalorder %s1392_s14, %s1392_s14 }
  0x2e   :  { %p1399_p8 = por %p1398_p7, %p1397_p6 }
  0x30   :  { %p1400_p9 = pnand %p1399_p8, %p1393_p5 }
  0x32   :  { %1403 = shalt.err (!%p1400_p9)
}
  0x33   :  { %51 = dma.hbm_to_vmem [thread:$0]  %s1604_s3, 1024, %s46_s18, [#allocation6], %s1457_s11, %s1457_s11, %s1458_s12  }
  0x34   :  { %s1461_s16 = smov [#allocation8]   ;;  %s1404_s21 = scalar_lea.hbm %s1606_s5, 1024 }
  0x35   :  { %s59_s17 = sshll.u32 %s1461_s16, 4  ;;  %p1405_p10 = scmp.ne.s32.totalorder %s1606_s5, %s1404_s21  ;;  %s60_s17 = int_to_ptr.vmem [resolvable:$true] %s59_s17 }
  0x36   :  { %p1408_p11 = scmp.lt.u32.totalorder %s1404_s21, %s1606_s5 }
  0x38   :  { %p1410_p12 = pnand %p1408_p11, %p1405_p10 }
  0x3a   :  { %1413 = shalt.err (!%p1410_p12)
}
  0x3b   :  { %s1414_s1 = scalar_lea.vmem %s60_s17, 1024  ;;  %p1419_p0 = scmp.lt.s32.totalorder %s60_s17, %s60_s17 }
  0x3c   :  { %p1415_p13 = scmp.ne.s32.totalorder %s60_s17, %s1414_s1  ;;  %p1420_p1 = scmp.lt.s32.totalorder %s1414_s1, %s1414_s1 }
  0x3e   :  { %p1421_p2 = por %p1420_p1, %p1419_p0 }
  0x40   :  { %p1422_p3 = pnand %p1421_p2, %p1415_p13 }
  0x42   :  { %1425 = shalt.err (!%p1422_p3)
}
  0x43   :  { %65 = dma.hbm_to_vmem [thread:$0]  %s1606_s5, 1024, %s60_s17, [#allocation9], %s1457_s11, %s1457_s11, %s1458_s12  }
  0x44   :  { %1448 = dma.done.wait [#allocation3], 1024  }
  0x45   :  { %1449 = vsyncadd [#allocation3], 4294966272 }
  0x46   :  { %1450 = dma.done.wait [#allocation6], 9216  }
  0x47   :  { %1451 = vsyncadd [#allocation6], 4294958080 }
  0x48   :  { %1452 = dma.done.wait [#allocation9], 1024  }
  0x49   :  { %1453 = vsyncadd [#allocation9], 4294966272  ;;  %v1258_v0 = vld [vmem:[#allocation5 + $0x40] sm:$0xff]   ;;  %v1262_v4 = vld [vmem:[#allocation5 + $0x48] sm:$0xff]   ;;  %vm1463_vm0 = vmmov 0   ;;  %s1464_s28 = smov [#allocation10]  }
  0x4a   :  { %v1259_v1 = vld [vmem:[#allocation5 + $0xc0] sm:$0xff]   ;;  %1103 = vmatprep.subr.bf16.mxu0 %v1258_v0  ;;  %v1263_v5 = vld [vmem:[#allocation5 + $0xc8] sm:$0xff]   ;;  %v1266_v8 = vld [vmem:[#allocation5 + $0x50] sm:$0xff]   ;;  %s1009_s29 = sshll.u32 %s1464_s28, 4  ;;  %s1010_s29 = int_to_ptr.vmem [resolvable:$true] %s1009_s29 }
  0x4b   :  { %v1260_v2 = vld [vmem:[#allocation5] sm:$0xff]   ;;  %1125 = vmatprep.subr.bf16.mxu1 %v1259_v1  ;;  %v1264_v6 = vld [vmem:[#allocation5 + $0x8] sm:$0xff]   ;;  %v1267_v9 = vld [vmem:[#allocation5 + $0xd0] sm:$0xff]   ;;  %p1431_p5 = scmp.lt.s32.totalorder %s1010_s29, %s1010_s29 }
  0x4c   :  { %v1261_v3 = vld [vmem:[#allocation5 + $0x80] sm:$0xff]   ;;  %1104 = vmatpush3.bf16.msra.mxu0 %v1260_v2  ;;  %v1265_v7 = vld [vmem:[#allocation5 + $0x88] sm:$0xff]   ;;  %v1268_v10 = vld [vmem:[#allocation5 + $0x10] sm:$0xff]  }
  0x4d   :  { %1126 = vmatpush3.bf16.msra.mxu1 %v1261_v3  ;;  %1105 = vmatprep.subr.bf16.mxu0 %v1262_v4  ;;  %v1269_v11 = vld [vmem:[#allocation5 + $0x90] sm:$0xff]   ;;  %v1270_v12 = vld [vmem:[#allocation5 + $0x58] sm:$0xff]   ;;  %v1274_v16 = vld [vmem:[#allocation5 + $0x60] sm:$0xff]  }
  0x4e   :  { %1127 = vmatprep.subr.bf16.mxu1 %v1263_v5  ;;  %v1271_v13 = vld [vmem:[#allocation5 + $0xd8] sm:$0xff]   ;;  %v1275_v17 = vld [vmem:[#allocation5 + $0xe0] sm:$0xff]   ;;  %v1278_v20 = vld [vmem:[#allocation5 + $0x68] sm:$0xff]  }
  0x4f   :  { %v1272_v14 = vld [vmem:[#allocation5 + $0x18] sm:$0xff]   ;;  %v1276_v18 = vld [vmem:[#allocation5 + $0x20] sm:$0xff]   ;;  %v1279_v21 = vld [vmem:[#allocation5 + $0xe8] sm:$0xff]  }
  0x50   :  { %1106 = vmatpush3.bf16.msra.mxu0 %v1264_v6  ;;  %v1273_v15 = vld [vmem:[#allocation5 + $0x98] sm:$0xff]   ;;  %v1277_v19 = vld [vmem:[#allocation5 + $0xa0] sm:$0xff]   ;;  %v1280_v22 = vld [vmem:[#allocation5 + $0x28] sm:$0xff]  }
  0x51   :  { %1128 = vmatpush3.bf16.msra.mxu1 %v1265_v7  ;;  %1107 = vmatprep.subr.bf16.mxu0 %v1266_v8  ;;  %v1281_v23 = vld [vmem:[#allocation5 + $0xa8] sm:$0xff]   ;;  %v1282_v24 = vld [vmem:[#allocation5 + $0x70] sm:$0xff]   ;;  %v1286_v28 = vld [vmem:[#allocation5 + $0x78] sm:$0xff]  }
  0x52   :  { %1129 = vmatprep.subr.bf16.mxu1 %v1267_v9  ;;  %v1283_v25 = vld [vmem:[#allocation5 + $0xf0] sm:$0xff]   ;;  %v1287_v29 = vld [vmem:[#allocation5 + $0xf8] sm:$0xff]   ;;  %v82_v32 = vld [vmem:[#allocation2 + $0x8] sm:$0xff] }
  0x53   :  { %v1284_v26 = vld [vmem:[#allocation5 + $0x30] sm:$0xff]   ;;  %v1288_v30 = vld [vmem:[#allocation5 + $0x38] sm:$0xff]   ;;  %v81_v34 = vld [vmem:[#allocation2] sm:$0xff]  ;;  %v90_v35 = vpack.c.bf16 %v82_v32, %v82_v32 }
  0x54   :  { %1108 = vmatpush3.bf16.msra.mxu0 %v1268_v10  ;;  %v1285_v27 = vld [vmem:[#allocation5 + $0xb0] sm:$0xff]   ;;  %v1289_v31 = vld [vmem:[#allocation5 + $0xb8] sm:$0xff]   ;;  %v89_v37 = vpack.c.bf16 %v81_v34, %v81_v34  ;;  %v1290_v40 = vld [vmem:[#allocation5 + $0x140] sm:$0xff]  }
  0x55   :  { %1130 = vmatpush3.bf16.msra.mxu1 %v1269_v11  ;;  %1109 = vmatprep.subr.bf16.mxu0 %v1270_v12  ;;  %v84_v33 = vld [vmem:[#allocation2 + $0x18] sm:$0xff]  ;;  %v83_v38 = vld [vmem:[#allocation2 + $0x10] sm:$0xff]  ;;  %v1291_v41 = vld [vmem:[#allocation5 + $0x1c0] sm:$0xff]  }
  0x56   :  { %1131 = vmatprep.subr.bf16.mxu1 %v1271_v13  ;;  %v92_v36 = vpack.c.bf16 %v84_v33, %v84_v33  ;;  %v91_v39 = vpack.c.bf16 %v83_v38, %v83_v38  ;;  %648 = vmatprep.mubr.bf16.mxu0 %v90_v35  ;;  %v1292_v42 = vld [vmem:[#allocation5 + $0x100] sm:$0xff]   ;;  %v1294_v44 = vld [vmem:[#allocation5 + $0x148] sm:$0xff]   ;;  %v1298_v48 = vld [vmem:[#allocation5 + $0x150] sm:$0xff]  }
  0x57   :  { %v1293_v43 = vld [vmem:[#allocation5 + $0x180] sm:$0xff]   ;;  %v1295_v45 = vld [vmem:[#allocation5 + $0x1c8] sm:$0xff]   ;;  %v1299_v49 = vld [vmem:[#allocation5 + $0x1d0] sm:$0xff]  }
  0x58   :  { %1110 = vmatpush3.bf16.msra.mxu0 %v1272_v14  ;;  %688 = vmatprep.mubr.bf16.mxu1 %v92_v36  ;;  %v1296_v46 = vld [vmem:[#allocation5 + $0x108] sm:$0xff]   ;;  %v1300_v50 = vld [vmem:[#allocation5 + $0x110] sm:$0xff]   ;;  %v1302_v52 = vld [vmem:[#allocation5 + $0x158] sm:$0xff]  }
  0x59   :  { %1132 = vmatpush3.bf16.msra.mxu1 %v1273_v15  ;;  %1111 = vmatprep.subr.bf16.mxu0 %v1274_v16  ;;  %v1297_v47 = vld [vmem:[#allocation5 + $0x188] sm:$0xff]   ;;  %v1301_v51 = vld [vmem:[#allocation5 + $0x190] sm:$0xff]   ;;  %v1303_v53 = vld [vmem:[#allocation5 + $0x1d8] sm:$0xff]  }
  0x5a   :  { %1133 = vmatprep.subr.bf16.mxu1 %v1275_v17  ;;  %v1304_v54 = vld [vmem:[#allocation5 + $0x118] sm:$0xff]   ;;  %v1306_v56 = vld [vmem:[#allocation5 + $0x160] sm:$0xff]   ;;  %v1310_v60 = vld [vmem:[#allocation5 + $0x168] sm:$0xff]   ;;  %v1462_v17 = vmov 0.0  }
  0x5b   :  { %v1305_v55 = vld [vmem:[#allocation5 + $0x198] sm:$0xff]   ;;  %v1307_v57 = vld [vmem:[#allocation5 + $0x1e0] sm:$0xff]   ;;  %v1311_v61 = vld [vmem:[#allocation5 + $0x1e8] sm:$0xff]  }
  0x5c   :  { %1112 = vmatpush3.bf16.msra.mxu0 %v1276_v18  ;;  %v1308_v58 = vld [vmem:[#allocation5 + $0x120] sm:$0xff]   ;;  %v1312_v62 = vld [vmem:[#allocation5 + $0x128] sm:$0xff]   ;;  %v1314_v0 = vld [vmem:[#allocation5 + $0x170] sm:$0xff]  }
  0x5d   :  { %1134 = vmatpush3.bf16.msra.mxu1 %v1277_v19  ;;  %1113 = vmatprep.subr.bf16.mxu0 %v1278_v20  ;;  %v1309_v59 = vld [vmem:[#allocation5 + $0x1a0] sm:$0xff]   ;;  %v1313_v63 = vld [vmem:[#allocation5 + $0x1a8] sm:$0xff]   ;;  %v1315_v1 = vld [vmem:[#allocation5 + $0x1f0] sm:$0xff]  }
  0x5e   :  { %1135 = vmatprep.subr.bf16.mxu1 %v1279_v21  ;;  %v1316_v2 = vld [vmem:[#allocation5 + $0x130] sm:$0xff]   ;;  %v1318_v4 = vld [vmem:[#allocation5 + $0x178] sm:$0xff]   ;;  %v86_v8 = vld [vmem:[#allocation2 + $0x28] sm:$0xff] }
  0x5f   :  { %v1317_v3 = vld [vmem:[#allocation5 + $0x1b0] sm:$0xff]   ;;  %v1319_v5 = vld [vmem:[#allocation5 + $0x1f8] sm:$0xff]   ;;  %v94_v10 = vpack.c.bf16 %v86_v8, %v86_v8  ;;  %v85_v12 = vld [vmem:[#allocation2 + $0x20] sm:$0xff] }
  0x60   :  { %1114 = vmatpush3.bf16.msra.mxu0 %v1280_v22  ;;  %v1320_v6 = vld [vmem:[#allocation5 + $0x138] sm:$0xff]   ;;  %v87_v13 = vld [vmem:[#allocation2 + $0x30] sm:$0xff]  ;;  %v93_v14 = vpack.c.bf16 %v85_v12, %v85_v12  ;;  %v1322_v16 = vld [vmem:[#allocation7] sm:$0xff]  }
  0x61   :  { %1136 = vmatpush3.bf16.msra.mxu1 %v1281_v23  ;;  %1115 = vmatprep.subr.bf16.mxu0 %v1282_v24  ;;  %v1321_v7 = vld [vmem:[#allocation5 + $0x1b8] sm:$0xff]   ;;  %v95_v15 = vpack.c.bf16 %v87_v13, %v87_v13  ;;  %v1323_v18 = vld [vmem:[#allocation7 + $0x8] sm:$0xff]   ;;  %v1324_v19 = vld [vmem:[#allocation7 + $0x10] sm:$0xff]  }
  0x62   :  { %1137 = vmatprep.subr.bf16.mxu1 %v1283_v25  ;;  %v88_v9 = vld [vmem:[#allocation2 + $0x38] sm:$0xff]  ;;  %v1326_v21 = vld [vmem:[#allocation7 + $0x20] sm:$0xff]   ;;  %v1327_v22 = vld [vmem:[#allocation7 + $0x28] sm:$0xff]  }
  0x63   :  { %v96_v11 = vpack.c.bf16 %v88_v9, %v88_v9  ;;  %v1325_v20 = vld [vmem:[#allocation7 + $0x18] sm:$0xff]   ;;  %v1328_v23 = vld [vmem:[#allocation7 + $0x30] sm:$0xff]   ;;  %v1330_v25 = vld [vmem:[#allocation8] sm:$0xff]  }
  0x64   :  { %1116 = vmatpush3.bf16.msra.mxu0 %v1284_v26  ;;  %v1329_v24 = vld [vmem:[#allocation7 + $0x38] sm:$0xff]   ;;  %v1331_v26 = vld [vmem:[#allocation8 + $0x8] sm:$0xff]   ;;  %v1020_v33 = vld [vmem:[%s1603_s2] ss:$0 sm:$0xff] }
  0x65   :  { %1138 = vmatpush3.bf16.msra.mxu1 %v1285_v27  ;;  %1117 = vmatprep.subr.bf16.mxu0 %v1286_v28  ;;  %v1332_v27 = vld [vmem:[#allocation8 + $0x10] sm:$0xff]   ;;  %v1333_v28 = vld [vmem:[#allocation8 + $0x18] sm:$0xff]  }
  0x66   :  { %1139 = vmatprep.subr.bf16.mxu1 %v1287_v29  ;;  %v1334_v29 = vld [vmem:[#allocation8 + $0x20] sm:$0xff]  }
  0x68   :  { %1118 = vmatpush3.bf16.msra.mxu0 %v1288_v30  ;;  %v1335_v30 = vld [vmem:[#allocation8 + $0x28] sm:$0xff]  }
  0x69   :  { %1140 = vmatpush3.bf16.msra.mxu1 %v1289_v31  ;;  %1147 = vmatprep.subr.bf16.mxu0 %v1290_v40 }
  0x6a   :  { %1169 = vmatprep.subr.bf16.mxu1 %v1291_v41 }
  0x6b   :  { %649 = vmatmul.mubr.bf16.vlgmr.msra.gmra.mrb[0].mxu0 %v89_v37 }
  0x6c   :  { %689 = vmatmul.mubr.bf16.vlgmr.msra.gmra.mrb[0].mxu1 %v91_v39  ;;  %1148 = vmatpush3.bf16.msra.mxu0 %v1292_v42 }
  0x6d   :  { %1170 = vmatpush3.bf16.msra.mxu1 %v1293_v43  ;;  %1149 = vmatprep.subr.bf16.mxu0 %v1294_v44 }
  0x6e   :  { %1171 = vmatprep.subr.bf16.mxu1 %v1295_v45  ;;  %728 = vmatprep.mubr.bf16.mxu0 %v94_v10 }
  0x6f   :  { %768 = vmatprep.mubr.bf16.mxu1 %v96_v11 }
  0x70   :  { %1150 = vmatpush3.bf16.msra.mxu0 %v1296_v46 }
  0x71   :  { %1172 = vmatpush3.bf16.msra.mxu1 %v1297_v47  ;;  %1151 = vmatprep.subr.bf16.mxu0 %v1298_v48 }
  0x72   :  { %1173 = vmatprep.subr.bf16.mxu1 %v1299_v49 }
  0x74   :  { %1152 = vmatpush3.bf16.msra.mxu0 %v1300_v50 }
  0x75   :  { %1174 = vmatpush3.bf16.msra.mxu1 %v1301_v51  ;;  %1153 = vmatprep.subr.bf16.mxu0 %v1302_v52 }
  0x76   :  { %1175 = vmatprep.subr.bf16.mxu1 %v1303_v53 }
  0x78   :  { %1154 = vmatpush3.bf16.msra.mxu0 %v1304_v54 }
  0x79   :  { %1176 = vmatpush3.bf16.msra.mxu1 %v1305_v55  ;;  %1155 = vmatprep.subr.bf16.mxu0 %v1306_v56 }
  0x7a   :  { %1177 = vmatprep.subr.bf16.mxu1 %v1307_v57 }
  0x7c   :  { %1156 = vmatpush3.bf16.msra.mxu0 %v1308_v58  ;;  %v1336_v58 = vld [vmem:[#allocation8 + $0x30] sm:$0xff]  }
  0x7d   :  { %1178 = vmatpush3.bf16.msra.mxu1 %v1309_v59  ;;  %1157 = vmatprep.subr.bf16.mxu0 %v1310_v60  ;;  %v1337_v59 = vld [vmem:[#allocation8 + $0x38] sm:$0xff]   ;;  %v1085_v60 = vld [vmem:[%s1605_s4] ss:$0 sm:$0xff]  ;;  %s1426_s4 = scalar_lea.vmem %s1010_s29, 128 }
  0x7e   :  { %1179 = vmatprep.subr.bf16.mxu1 %v1311_v61  ;;  %p1427_p4 = scmp.ne.s32.totalorder %s1010_s29, %s1426_s4  ;;  %p1432_p6 = scmp.lt.s32.totalorder %s1426_s4, %s1426_s4 }
  0x80   :  { %1158 = vmatpush3.bf16.msra.mxu0 %v1312_v62  ;;  %p1433_p7 = por %p1432_p6, %p1431_p5 }
  0x81   :  { %1180 = vmatpush3.bf16.msra.mxu1 %v1313_v63  ;;  %1159 = vmatprep.subr.bf16.mxu0 %v1314_v0 }
  0x82   :  { %1181 = vmatprep.subr.bf16.mxu1 %v1315_v1  ;;  %p1434_p8 = pnand %p1433_p7, %p1427_p4 }
  0x84   :  { %1160 = vmatpush3.bf16.msra.mxu0 %v1316_v2 }
  0x85   :  { %1182 = vmatpush3.bf16.msra.mxu1 %v1317_v3  ;;  %1161 = vmatprep.subr.bf16.mxu0 %v1318_v4  ;;  %v1094_v4 = vld [vmem:[%s1607_s6] ss:$0 sm:$0xff] }
  0x86   :  { %1183 = vmatprep.subr.bf16.mxu1 %v1319_v5 }
  0x88   :  { %1162 = vmatpush3.bf16.msra.mxu0 %v1320_v6 }
  0x89   :  { %1184 = vmatpush3.bf16.msra.mxu1 %v1321_v7  ;;  %1209 = vmatprep.subr.bf16.mxu0 %v1462_v17 }
  0x8a   :  { %1229 = vmatprep.subr.bf16.mxu1 %v1462_v17 }
  0x8b   :  { %729 = vmatmul.mubr.bf16.vlgmr.msra.gmra.mrb[4].mxu0 %v93_v14 }
  0x8c   :  { %769 = vmatmul.mubr.bf16.vlgmr.msra.gmra.mrb[4].mxu1 %v95_v15  ;;  %1210 = vmatpush3.bf16.msra.mxu0 %v1322_v16 }
  0x8d   :  { %1211 = vmatprep.subr.bf16.mxu0 %v1462_v17  ;;  %1225 = vmatprep.mubr.msk.bf16.mxu0 %vm1463_vm0, %v1462_v17 }
  0x8e   :  { %1245 = vmatprep.mubr.msk.bf16.mxu1 %vm1463_vm0, %v1462_v17  ;;  %1230 = vmatpush3.bf16.msra.mxu1 %v1330_v25 }
  0x8f   :  { %1231 = vmatprep.subr.bf16.mxu1 %v1462_v17 }
  0x90   :  { %1212 = vmatpush3.bf16.msra.mxu0 %v1323_v18 }
  0x91   :  { %1213 = vmatprep.subr.bf16.mxu0 %v1462_v17 }
  0x92   :  { %1232 = vmatpush3.bf16.msra.mxu1 %v1331_v26 }
  0x93   :  { %1233 = vmatprep.subr.bf16.mxu1 %v1462_v17 }
  0x94   :  { %1214 = vmatpush3.bf16.msra.mxu0 %v1324_v19 }
  0x95   :  { %1215 = vmatprep.subr.bf16.mxu0 %v1462_v17 }
  0x96   :  { %1234 = vmatpush3.bf16.msra.mxu1 %v1332_v27 }
  0x97   :  { %1235 = vmatprep.subr.bf16.mxu1 %v1462_v17 }
  0x98   :  { %1216 = vmatpush3.bf16.msra.mxu0 %v1325_v20 }
  0x99   :  { %1217 = vmatprep.subr.bf16.mxu0 %v1462_v17 }
  0x9a   :  { %1236 = vmatpush3.bf16.msra.mxu1 %v1333_v28 }
  0x9b   :  { %1237 = vmatprep.subr.bf16.mxu1 %v1462_v17 }
  0x9c   :  { %1218 = vmatpush3.bf16.msra.mxu0 %v1326_v21 }
  0x9d   :  { %1219 = vmatprep.subr.bf16.mxu0 %v1462_v17 }
  0x9e   :  { %1238 = vmatpush3.bf16.msra.mxu1 %v1334_v29 }
  0x9f   :  { %1239 = vmatprep.subr.bf16.mxu1 %v1462_v17 }
  0xa0   :  { %1220 = vmatpush3.bf16.msra.mxu0 %v1327_v22 }
  0xa1   :  { %1221 = vmatprep.subr.bf16.mxu0 %v1462_v17 }
  0xa2   :  { %1240 = vmatpush3.bf16.msra.mxu1 %v1335_v30 }
  0xa3   :  { %1241 = vmatprep.subr.bf16.mxu1 %v1462_v17 }
  0xa4   :  { %1222 = vmatpush3.bf16.msra.mxu0 %v1328_v23 }
  0xa5   :  { %1223 = vmatprep.subr.bf16.mxu0 %v1462_v17 }
  0xa6   :  { %1242 = vmatpush3.bf16.msra.mxu1 %v1336_v58 }
  0xa7   :  { %1243 = vmatprep.subr.bf16.mxu1 %v1462_v17 }
  0xa8   :  { %1224 = vmatpush3.bf16.msra.mxu0 %v1329_v24 }
  0xaa   :  { %1244 = vmatpush3.bf16.msra.mxu1 %v1337_v59 }
 0x13e   :  { %v1119_v31 = vpop.f32.mrb[0].mxu0 }
 0x13f   :  { %v1141_v32 = vpop.f32.mrb[0].mxu1  ;;  %v1120_v34 = vpop.f32.mrb[1].mxu0 }
 0x140   :  { %v1142_v35 = vpop.f32.mrb[1].mxu1  ;;  %v1121_v36 = vadd.f32 %v1120_v34, %v1119_v31  ;;  %v1122_v38 = vpop.f32.mrb[2].mxu0 }
 0x141   :  { %v1143_v37 = vadd.f32 %v1142_v35, %v1141_v32  ;;  %v1144_v39 = vpop.f32.mrb[2].mxu1  ;;  %v1123_v40 = vpop.f32.mrb[3].mxu0 }
 0x142   :  { %v1145_v41 = vpop.f32.mrb[3].mxu1  ;;  %v651_v42 = vadd.f32 %v1121_v36, %v1020_v33 }
 0x144   :  { %v691_v43 = vadd.f32 %v1143_v37, %v651_v42 }
 0x15e   :  { %v1163_v44 = vpop.f32.mrb[4].mxu0 }
 0x15f   :  { %v1185_v45 = vpop.f32.mrb[4].mxu1  ;;  %v1164_v46 = vpop.f32.mrb[5].mxu0 }
 0x160   :  { %v1165_v47 = vadd.f32 %v1164_v46, %v1163_v44  ;;  %v1186_v48 = vpop.f32.mrb[5].mxu1  ;;  %v1166_v49 = vpop.f32.mrb[6].mxu0 }
 0x161   :  { %v1187_v50 = vadd.f32 %v1186_v48, %v1185_v45  ;;  %v1188_v51 = vpop.f32.mrb[6].mxu1  ;;  %v1167_v52 = vpop.f32.mrb[7].mxu0 }
 0x162   :  { %v731_v53 = vadd.f32 %v1165_v47, %v691_v43  ;;  %v1189_v54 = vpop.f32.mrb[7].mxu1 }
 0x164   :  { %v771_v55 = vadd.f32 %v1187_v50, %v731_v53 }
 0x166   :  { %v776_v56 = vmax.f32 %v771_v55, 0.0 }
 0x168   :  { %v777_v57 = vpack.c.bf16 %v776_v56, %v776_v56 }
 0x16a   :  { %1226 = vmatmul.mubr.bf16.vlgmr.msra.gmra.mrb[8].mxu0 %v777_v57 }
 0x23d   :  { %v883_v61 = vpop.f32.mrb[8].mxu0 }
 0x23e   :  { %v884_v62 = vadd.f32 %v1085_v60, %v883_v61  ;;  %v1227_v63 = vpop.f32.mrb[9].mxu0 }
 0x23f   :  { %v886_v0 = vpop.f32.mrb[10].mxu0 }
 0x240   :  { %v889_v1 = vmax.f32 %v884_v62, 0.0  ;;  %v1228_v2 = vpop.f32.mrb[11].mxu0 }
 0x242   :  { %v890_v3 = vpack.c.bf16 %v889_v1, %v889_v1 }
 0x244   :  { %1246 = vmatmul.mubr.bf16.vlgmr.msra.gmra.mrb[8].mxu1 %v890_v3 }
 0x317   :  { %v996_v5 = vpop.f32.mrb[8].mxu1 }
 0x318   :  { %v997_v6 = vadd.f32 %v1094_v4, %v996_v5  ;;  %v1247_v7 = vpop.f32.mrb[9].mxu1 }
 0x319   :  { %v999_v8 = vpop.f32.mrb[10].mxu1 }
 0x31a   :  { %1002 = vst [vmem:[#allocation10] sm:$0xff] %v997_v6  ;;  %v1248_v9 = vpop.f32.mrb[11].mxu1 }
 0x31b   :  { %1437 = shalt.err (!%p1434_p8)
}
 0x31c   :  { %s1438_s6 = scalar_lea.hbm %s1608_s7, 128 }
 0x31d   :  { %p1439_p9 = scmp.ne.s32.totalorder %s1608_s7, %s1438_s6  ;;  %p1442_p10 = scmp.lt.u32.totalorder %s1438_s6, %s1608_s7 }
 0x31f   :  { %p1444_p11 = pnand %p1442_p10, %p1439_p9 }
 0x321   :  { %1447 = shalt.err (!%p1444_p11)
}
 0x322   :  { %1012 = dma.vmem_to_hbm [thread:$0]  %s1010_s29, 128, %s1608_s7, [#allocation4]  }
 0x323   :  { %1454 = dma.done.wait [#allocation4], 128  }
 0x324   :  { %1455 = vsyncadd [#allocation4], 4294967168 }
 0x325   :  { %1016 = vsyncpa [#allocation3], 1 }
 0x326   :  { %1017 = vsyncpa [#allocation6], 1 }
 0x327   :  { %1018 = vsyncpa [#allocation9], 1 }
 0x328   :  { %1019 = vsyncpa [#allocation4], 1 }

</bundles_post_ra>
